<compile_context>
chip_gen: v7x
topology: tpu7x:2x2x1
jax: 0.10.0
libtpu: 0.0.40
codegen_flags: <defaults>
</compile_context>

<pallas_src>
import functools

import jax
import jax.numpy as jnp
from jax.experimental import pallas as pl
from jax.experimental.pallas import tpu as pltpu
import numpy as np

LANE = 128      # last-dim granularity (lane width)
SUBLANE = 8     # second-to-last-dim granularity (f32 sublanes)


def _round_up(n, m):
    return (n + m - 1) // m * m


def _pad2d(a, rows, cols):
    """Zero-pad a 2-D array up to (rows, cols)."""
    r, c = a.shape
    return jnp.pad(a, ((0, rows - r), (0, cols - c)))


def _pick_batch_tile(b_pad):
    """Largest tile <= 512 that divides the (sublane-padded) batch."""
    if b_pad <= 512:
        return b_pad
    for tb in (512, 384, 256, 128, 64, 32, 16, 8):
        if b_pad % tb == 0:
            return tb
    return SUBLANE


def decoder_kernel(x_ref, w1_ref, b1_ref, w2_ref, b2_ref, w3_ref, b3_ref, o_ref):
    # Hot path: three MXU matmuls (bf16 operands, f32 accumulation) fused with
    # the VPU ReLU and EUP tanh epilogues; biases are resident (1, N) f32 rows.
    x = x_ref[...]                                            # bf16 [tb, Zp]
    h1 = jnp.dot(x, w1_ref[...],
                 preferred_element_type=jnp.float32) + b1_ref[...]
    h1 = jnp.maximum(h1, 0.0)                                 # ReLU (f32, VPU)
    h2 = jnp.dot(h1.astype(w2_ref.dtype), w2_ref[...],
                 preferred_element_type=jnp.float32) + b2_ref[...]
    h2 = jnp.tanh(h2)                                         # tanh (f32, EUP)
    y = jnp.dot(h2.astype(w3_ref.dtype), w3_ref[...],
                preferred_element_type=jnp.float32) + b3_ref[...]
    o_ref[...] = y.astype(o_ref.dtype)


def _vmem_bytes_estimate(tb, z_p, h_p, o_p, wt_bytes, act_bytes):
    x_tile = tb * z_p * wt_bytes                 # bf16 input tile
    o_tile = tb * o_p * act_bytes                # f32 output tile
    weights = (z_p * h_p + h_p * h_p + h_p * o_p) * wt_bytes
    biases = (2 * h_p + o_p) * act_bytes
    acts = 2 * tb * h_p * act_bytes              # h1 / h2 intermediates
    # inputs/outputs are double-buffered by the BlockSpec pipeline
    return 2 * (x_tile + o_tile) + 2 * (weights + biases) + acts


@functools.partial(jax.jit, static_argnames=("compute_dtype",))
def decoder_forward(x, params, *, compute_dtype=jnp.bfloat16):
    """x: [B, z_dim] f32. params: dict of weights/biases (f32). Returns [B, output_dim] f32."""
    w1, b1, w2, b2, w3, b3 = (params[k] for k in ("w1", "b1", "w2", "b2", "w3", "b3"))
    B, z_dim = x.shape
    hidden_dim = w1.shape[1]
    output_dim = w3.shape[1]

    # ---- lane-dense / sublane-aligned padded shapes -------------------------
    z_p = _round_up(z_dim, LANE)
    h_p = _round_up(hidden_dim, LANE)
    o_p = _round_up(output_dim, LANE)
    b_p = _round_up(B, SUBLANE)

    tb = _pick_batch_tile(b_p)
    grid = (b_p // tb,)

    # ---- pad operands (zero padding preserves the forward semantics) --------
    x_p = _pad2d(x, b_p, z_p).astype(compute_dtype)
    w1_p = _pad2d(w1, z_p, h_p).astype(compute_dtype)
    w2_p = _pad2d(w2, h_p, h_p).astype(compute_dtype)
    w3_p = _pad2d(w3, h_p, o_p).astype(compute_dtype)
    b1_p = _pad2d(b1, 1, h_p).astype(jnp.float32)
    b2_p = _pad2d(b2, 1, h_p).astype(jnp.float32)
    b3_p = _pad2d(b3, 1, o_p).astype(jnp.float32)

    wt_bytes = jnp.dtype(compute_dtype).itemsize
    vmem_est = _vmem_bytes_estimate(tb, z_p, h_p, o_p, wt_bytes, 4)
    vmem_limit = min(64 * 1024 * 1024, max(int(1.5 * vmem_est), 16 * 1024 * 1024))

    # Advisory cost hint for XLA's scheduler around the custom call.
    flops = 2 * b_p * (z_p * h_p + h_p * h_p + h_p * o_p)
    transcendentals = b_p * h_p                       # tanh
    bytes_accessed = (
        b_p * z_p * wt_bytes + b_p * o_p * 4
        + (z_p * h_p + h_p * h_p + h_p * o_p) * wt_bytes
        + (2 * h_p + o_p) * 4
    )
    cost = pl.CostEstimate(flops=flops, transcendentals=transcendentals,
                           bytes_accessed=bytes_accessed)

    full = lambda i: (0, 0)  # weights/biases resident for every batch tile

    # TODO(synk): for very large hidden_dim (>= ~2048) add a K-reduction grid
    # axis over hidden_dim with an f32 VMEM accumulator (pl.when init/finalize)
    # so W2 does not have to be fully resident (v7x has only 64 MiB VMEM).
    out_p = pl.pallas_call(
        decoder_kernel,
        out_shape=jax.ShapeDtypeStruct((b_p, o_p), jnp.float32),
        grid_spec=pltpu.PrefetchScalarGridSpec(
            num_scalar_prefetch=0,
            grid=grid,
            in_specs=[
                pl.BlockSpec((tb, z_p), lambda i: (i, 0)),   # x tile
                pl.BlockSpec((z_p, h_p), full),              # W1
                pl.BlockSpec((1, h_p), full),                # b1
                pl.BlockSpec((h_p, h_p), full),              # W2
                pl.BlockSpec((1, h_p), full),                # b2
                pl.BlockSpec((h_p, o_p), full),              # W3
                pl.BlockSpec((1, o_p), full),                # b3
            ],
            out_specs=pl.BlockSpec((tb, o_p), lambda i: (i, 0)),
        ),
        compiler_params=pltpu.CompilerParams(
            dimension_semantics=("parallel",),   # megacore sharding on v7x
            vmem_limit_bytes=vmem_limit,
        ),
        cost_estimate=cost,
    )(x_p, w1_p, b1_p, w2_p, b2_p, w3_p, b3_p)

    return out_p[:B, :output_dim]


def init_params(key, z_dim, hidden_dim, output_dim):
    """Deterministic synthetic parameters (PyTorch-Linear shapes, stored transposed)."""
    ks = jax.random.split(key, 6)
    scale = 0.1
    return {
        "w1": scale * jax.random.normal(ks[0], (z_dim, hidden_dim), jnp.float32),
        "b1": scale * jax.random.normal(ks[1], (1, hidden_dim), jnp.float32),
        "w2": scale * jax.random.normal(ks[2], (hidden_dim, hidden_dim), jnp.float32),
        "b2": scale * jax.random.normal(ks[3], (1, hidden_dim), jnp.float32),
        "w3": scale * jax.random.normal(ks[4], (hidden_dim, output_dim), jnp.float32),
        "b3": scale * jax.random.normal(ks[5], (1, output_dim), jnp.float32),
    }


def decoder_ref(x, params):
    """Pure-JAX f32 reference matching the PyTorch forward."""
    h = jax.nn.relu(x @ params["w1"] + params["b1"])
    h = jnp.tanh(h @ params["w2"] + params["b2"])
    return h @ params["w3"] + params["b3"]


if __name__ == "__main__":
    B, z_dim, hidden_dim, output_dim = 16, 16, 32, 64

    key = jax.random.PRNGKey(0)
    kx, kp = jax.random.split(key)
    x = jax.random.normal(kx, (B, z_dim), jnp.float32)
    params = init_params(kp, z_dim, hidden_dim, output_dim)

    out = decoder_forward(x, params)
    out = jax.block_until_ready(out)

    ref = decoder_ref(x, params)
    # bf16 MXU operands with f32 accumulation -> looser tolerance vs f32 ref.
    np.testing.assert_allclose(np.asarray(out), np.asarray(ref), rtol=3e-2, atol=3e-2)

    print("KERNEL_OK")
</pallas_src>

<mosaic_0001>
module attributes {stable_mosaic.version = 11 : i64} {
  func.func @decoder_kernel(%arg0: i32, %arg1: memref<16x128xbf16, #tpu.memory_space<vmem>>, %arg2: memref<128x128xbf16, #tpu.memory_space<vmem>>, %arg3: memref<1x128xf32, #tpu.memory_space<vmem>>, %arg4: memref<128x128xbf16, #tpu.memory_space<vmem>>, %arg5: memref<1x128xf32, #tpu.memory_space<vmem>>, %arg6: memref<128x128xbf16, #tpu.memory_space<vmem>>, %arg7: memref<1x128xf32, #tpu.memory_space<vmem>>, %arg8: memref<16x128xf32, #tpu.memory_space<vmem>>) attributes {dimension_semantics = [#tpu.dimension_semantics<parallel>], iteration_bounds = array<i64: 1>, scalar_prefetch = 0 : i64, scratch_operands = 0 : i64, tpu.core_type = #tpu.core_type<tc>, window_params = [{transform_indices = @transform_0, window_bounds = array<i64: 16, 128>}, {pipeline_mode = #tpu.pipeline_mode<synchronous>, transform_indices = @transform_1, window_bounds = array<i64: 128, 128>}, {pipeline_mode = #tpu.pipeline_mode<synchronous>, transform_indices = @transform_2, window_bounds = array<i64: 1, 128>}, {pipeline_mode = #tpu.pipeline_mode<synchronous>, transform_indices = @transform_3, window_bounds = array<i64: 128, 128>}, {pipeline_mode = #tpu.pipeline_mode<synchronous>, transform_indices = @transform_4, window_bounds = array<i64: 1, 128>}, {pipeline_mode = #tpu.pipeline_mode<synchronous>, transform_indices = @transform_5, window_bounds = array<i64: 128, 128>}, {pipeline_mode = #tpu.pipeline_mode<synchronous>, transform_indices = @transform_6, window_bounds = array<i64: 1, 128>}, {transform_indices = @transform_7, window_bounds = array<i64: 16, 128>}]} {
    %c0 = arith.constant 0 : index
    %c0_0 = arith.constant 0 : index
    %0 = vector.load %arg1[%c0, %c0_0] : memref<16x128xbf16, #tpu.memory_space<vmem>>, vector<16x128xbf16>
    %c0_1 = arith.constant 0 : index
    %c0_2 = arith.constant 0 : index
    %1 = vector.load %arg2[%c0_1, %c0_2] : memref<128x128xbf16, #tpu.memory_space<vmem>>, vector<128x128xbf16>
    %cst = arith.constant dense<0.000000e+00> : vector<16x128xf32>
    %2 = tpu.matmul %0, %1, %cst {dimension_numbers = #tpu.dot_dimension_numbers<[1], [0], [0], [1], [0, 0, 1, 1], [], []>} : vector<16x128xbf16>, vector<128x128xbf16>, vector<16x128xf32> -> vector<16x128xf32>
    %c0_3 = arith.constant 0 : index
    %c0_4 = arith.constant 0 : index
    %3 = vector.load %arg3[%c0_3, %c0_4] : memref<1x128xf32, #tpu.memory_space<vmem>>, vector<1x128xf32>
    %4 = vector.broadcast %3 : vector<1x128xf32> to vector<16x128xf32>
    %5 = arith.addf %2, %4 : vector<16x128xf32>
    %cst_5 = arith.constant 0.000000e+00 : f32
    %6 = vector.broadcast %cst_5 : f32 to vector<16x128xf32>
    %7 = arith.maximumf %5, %6 : vector<16x128xf32>
    %8 = arith.truncf %7 : vector<16x128xf32> to vector<16x128xbf16>
    %c0_6 = arith.constant 0 : index
    %c0_7 = arith.constant 0 : index
    %9 = vector.load %arg4[%c0_6, %c0_7] : memref<128x128xbf16, #tpu.memory_space<vmem>>, vector<128x128xbf16>
    %cst_8 = arith.constant dense<0.000000e+00> : vector<16x128xf32>
    %10 = tpu.matmul %8, %9, %cst_8 {dimension_numbers = #tpu.dot_dimension_numbers<[1], [0], [0], [1], [0, 0, 1, 1], [], []>} : vector<16x128xbf16>, vector<128x128xbf16>, vector<16x128xf32> -> vector<16x128xf32>
    %c0_9 = arith.constant 0 : index
    %c0_10 = arith.constant 0 : index
    %11 = vector.load %arg5[%c0_9, %c0_10] : memref<1x128xf32, #tpu.memory_space<vmem>>, vector<1x128xf32>
    %12 = vector.broadcast %11 : vector<1x128xf32> to vector<16x128xf32>
    %13 = arith.addf %10, %12 : vector<16x128xf32>
    %14 = math.tanh %13 : vector<16x128xf32>
    %15 = arith.truncf %14 : vector<16x128xf32> to vector<16x128xbf16>
    %c0_11 = arith.constant 0 : index
    %c0_12 = arith.constant 0 : index
    %16 = vector.load %arg6[%c0_11, %c0_12] : memref<128x128xbf16, #tpu.memory_space<vmem>>, vector<128x128xbf16>
    %cst_13 = arith.constant dense<0.000000e+00> : vector<16x128xf32>
    %17 = tpu.matmul %15, %16, %cst_13 {dimension_numbers = #tpu.dot_dimension_numbers<[1], [0], [0], [1], [0, 0, 1, 1], [], []>} : vector<16x128xbf16>, vector<128x128xbf16>, vector<16x128xf32> -> vector<16x128xf32>
    %c0_14 = arith.constant 0 : index
    %c0_15 = arith.constant 0 : index
    %18 = vector.load %arg7[%c0_14, %c0_15] : memref<1x128xf32, #tpu.memory_space<vmem>>, vector<1x128xf32>
    %19 = vector.broadcast %18 : vector<1x128xf32> to vector<16x128xf32>
    %20 = arith.addf %17, %19 : vector<16x128xf32>
    %c0_16 = arith.constant 0 : index
    %c0_17 = arith.constant 0 : index
    %21 = vector.load %arg8[%c0_16, %c0_17] : memref<16x128xf32, #tpu.memory_space<vmem>>, vector<16x128xf32>
    tpu.vector_store %arg8[%c0_16, %c0_17], %20 {strides = array<i32>} : memref<16x128xf32, #tpu.memory_space<vmem>>, vector<16x128xf32>,
    return
  }
  func.func @transform_0(%arg0: i32) -> (i32, i32) {
    %c0_i32 = arith.constant 0 : i32
    %c0_i32_0 = arith.constant 0 : i32
    return %arg0, %c0_i32 : i32, i32
  }
  func.func @transform_1(%arg0: i32) -> (i32, i32) {
    %c0_i32 = arith.constant 0 : i32
    %c0_i32_0 = arith.constant 0 : i32
    %c0_i32_1 = arith.constant 0 : i32
    return %c0_i32, %c0_i32_0 : i32, i32
  }
  func.func @transform_2(%arg0: i32) -> (i32, i32) {
    %c0_i32 = arith.constant 0 : i32
    %c0_i32_0 = arith.constant 0 : i32
    %c0_i32_1 = arith.constant 0 : i32
    return %c0_i32, %c0_i32_0 : i32, i32
  }
  func.func @transform_3(%arg0: i32) -> (i32, i32) {
    %c0_i32 = arith.constant 0 : i32
    %c0_i32_0 = arith.constant 0 : i32
    %c0_i32_1 = arith.constant 0 : i32
    return %c0_i32, %c0_i32_0 : i32, i32
  }
  func.func @transform_4(%arg0: i32) -> (i32, i32) {
    %c0_i32 = arith.constant 0 : i32
    %c0_i32_0 = arith.constant 0 : i32
    %c0_i32_1 = arith.constant 0 : i32
    return %c0_i32, %c0_i32_0 : i32, i32
  }
  func.func @transform_5(%arg0: i32) -> (i32, i32) {
    %c0_i32 = arith.constant 0 : i32
    %c0_i32_0 = arith.constant 0 : i32
    %c0_i32_1 = arith.constant 0 : i32
    return %c0_i32, %c0_i32_0 : i32, i32
  }
  func.func @transform_6(%arg0: i32) -> (i32, i32) {
    %c0_i32 = arith.constant 0 : i32
    %c0_i32_0 = arith.constant 0 : i32
    %c0_i32_1 = arith.constant 0 : i32
    return %c0_i32, %c0_i32_0 : i32, i32
  }
  func.func @transform_7(%arg0: i32) -> (i32, i32) {
    %c0_i32 = arith.constant 0 : i32
    %c0_i32_0 = arith.constant 0 : i32
    return %arg0, %c0_i32 : i32, i32
  }
}

</mosaic_0001>

<bundles_post_ra>
// kernel: decoder_forward.1
= control target key start
LH: loop header
LB: loop body
LE: loop exit
PB: predicated region body
PF: predicated region fallthrough
CT: control target
= control target key end

     0   :  { %v569_v1 = vmov 0.0   ;;  %vm570_vm0 = vmmov 0   ;;  %s740_s0 = inlined_call_operand.vmem [shape: bf16[16,128], index: 0, kind: input, shape index: {}]   ;;  %s741_s1 = inlined_call_operand.vmem [shape: bf16[128,128], index: 1, kind: input, shape index: {}]   ;;  %s742_s2 = inlined_call_operand.vmem [shape: f32[1,128], index: 2, kind: input, shape index: {}]   ;;  %s743_s3 = inlined_call_operand.vmem [shape: bf16[128,128], index: 3, kind: input, shape index: {}]   ;;  %s744_s4 = inlined_call_operand.vmem [shape: f32[1,128], index: 4, kind: input, shape index: {}]   ;;  %s745_s5 = inlined_call_operand.vmem [shape: bf16[128,128], index: 5, kind: input, shape index: {}]   ;;  %s746_s6 = inlined_call_operand.vmem [shape: f32[1,128], index: 6, kind: input, shape index: {}]   ;;  %s747_s7 = inlined_call_operand.hbm [shape: f32[16,128], index: 7, kind: output, shape index: {}]  }
   0x1   :  { %v516_v0 = vld [vmem:[%s741_s1] sm:$0xff]   ;;  %451 = vmatprep.subr.bf16.mxu0 %v569_v1  ;;  %471 = vmatprep.subr.bf16.mxu1 %v569_v1  ;;  %v517_v2 = vld [vmem:[%s741_s1 + $0x8] sm:$0xff]   ;;  %v518_v3 = vld [vmem:[%s741_s1 + $0x10] sm:$0xff]  }
   0x2   :  { %452 = vmatpush3.bf16.msra.mxu0 %v516_v0  ;;  %467 = vmatprep.mubr.msk.bf16.mxu0 %vm570_vm0, %v569_v1  ;;  %v525_v4 = vld [vmem:[%s743_s3] sm:$0xff]   ;;  %v519_v5 = vld [vmem:[%s741_s1 + $0x18] sm:$0xff]   ;;  %v526_v6 = vld [vmem:[%s743_s3 + $0x8] sm:$0xff]  }
   0x3   :  { %453 = vmatprep.subr.bf16.mxu0 %v569_v1  ;;  %487 = vmatprep.mubr.msk.bf16.mxu1 %vm570_vm0, %v569_v1  ;;  %v520_v7 = vld [vmem:[%s741_s1 + $0x20] sm:$0xff]   ;;  %v527_v8 = vld [vmem:[%s743_s3 + $0x10] sm:$0xff]   ;;  %v521_v9 = vld [vmem:[%s741_s1 + $0x28] sm:$0xff]  }
   0x4   :  { %472 = vmatpush3.bf16.msra.mxu1 %v525_v4  ;;  %v528_v10 = vld [vmem:[%s743_s3 + $0x18] sm:$0xff]   ;;  %v522_v11 = vld [vmem:[%s741_s1 + $0x30] sm:$0xff]  }
   0x5   :  { %473 = vmatprep.subr.bf16.mxu1 %v569_v1 }
   0x6   :  { %454 = vmatpush3.bf16.msra.mxu0 %v517_v2 }
   0x7   :  { %455 = vmatprep.subr.bf16.mxu0 %v569_v1 }
   0x8   :  { %474 = vmatpush3.bf16.msra.mxu1 %v526_v6 }
   0x9   :  { %475 = vmatprep.subr.bf16.mxu1 %v569_v1 }
   0xa   :  { %456 = vmatpush3.bf16.msra.mxu0 %v518_v3 }
   0xb   :  { %457 = vmatprep.subr.bf16.mxu0 %v569_v1 }
   0xc   :  { %476 = vmatpush3.bf16.msra.mxu1 %v527_v8 }
   0xd   :  { %477 = vmatprep.subr.bf16.mxu1 %v569_v1 }
   0xe   :  { %458 = vmatpush3.bf16.msra.mxu0 %v519_v5 }
   0xf   :  { %459 = vmatprep.subr.bf16.mxu0 %v569_v1 }
  0x12   :  { %460 = vmatpush3.bf16.msra.mxu0 %v520_v7 }
  0x13   :  { %461 = vmatprep.subr.bf16.mxu0 %v569_v1 }
  0x16   :  { %462 = vmatpush3.bf16.msra.mxu0 %v521_v9 }
  0x17   :  { %12 = vsyncpa [#allocation3], 0  ;;  %463 = vmatprep.subr.bf16.mxu0 %v569_v1  ;;  %478 = vmatpush3.bf16.msra.mxu1 %v528_v10  ;;  %v529_v12 = vld [vmem:[%s743_s3 + $0x20] sm:$0xff]   ;;  %v523_v13 = vld [vmem:[%s741_s1 + $0x38] sm:$0xff]   ;;  %s571_s29 = smov [#allocation2]  }
  0x18   :  { %479 = vmatprep.subr.bf16.mxu1 %v569_v1  ;;  %v530_v14 = vld [vmem:[%s743_s3 + $0x28] sm:$0xff]   ;;  %v524_v15 = vld [vmem:[%s740_s0] sm:$0xff]   ;;  %v531_v16 = vld [vmem:[%s743_s3 + $0x30] sm:$0xff]   ;;  %s385_s30 = sshll.u32 %s571_s29, 4  ;;  %s386_s30 = int_to_ptr.vmem [resolvable:$true] %s385_s30 }
  0x19   :  { %v532_v17 = vld [vmem:[%s743_s3 + $0x38] sm:$0xff]   ;;  %v533_v18 = vld [vmem:[%s745_s5] sm:$0xff]   ;;  %v534_v19 = vld [vmem:[%s745_s5 + $0x8] sm:$0xff]   ;;  %p550_p1 = scmp.lt.s32.totalorder %s386_s30, %s386_s30 }
  0x1a   :  { %464 = vmatpush3.bf16.msra.mxu0 %v522_v11  ;;  %v535_v20 = vld [vmem:[%s745_s5 + $0x10] sm:$0xff]   ;;  %v536_v21 = vld [vmem:[%s745_s5 + $0x18] sm:$0xff]   ;;  %v396_v22 = vld [vmem:[%s742_s2] ss:$0 sm:$0xff] }
  0x1b   :  { %465 = vmatprep.subr.bf16.mxu0 %v569_v1  ;;  %480 = vmatpush3.bf16.msra.mxu1 %v529_v12  ;;  %v537_v32 = vld [vmem:[%s745_s5 + $0x20] sm:$0xff]   ;;  %v538_v33 = vld [vmem:[%s745_s5 + $0x28] sm:$0xff]   ;;  %v539_v34 = vld [vmem:[%s745_s5 + $0x30] sm:$0xff]  }
  0x1c   :  { %481 = vmatprep.subr.bf16.mxu1 %v569_v1  ;;  %v540_v35 = vld [vmem:[%s745_s5 + $0x38] sm:$0xff]   ;;  %v406_v36 = vld [vmem:[%s744_s4] ss:$0 sm:$0xff]  ;;  %s545_s4 = scalar_lea.vmem %s386_s30, 256 }
  0x1d   :  { %v415_v46 = vld [vmem:[%s746_s6] ss:$0 sm:$0xff]  ;;  %p546_p0 = scmp.ne.s32.totalorder %s386_s30, %s545_s4  ;;  %p551_p2 = scmp.lt.s32.totalorder %s545_s4, %s545_s4 }
  0x1e   :  { %466 = vmatpush3.bf16.msra.mxu0 %v523_v13 }
  0x1f   :  { %482 = vmatpush3.bf16.msra.mxu1 %v530_v14  ;;  %491 = vmatprep.subr.bf16.mxu0 %v569_v1  ;;  %p552_p3 = por %p551_p2, %p550_p1 }
  0x20   :  { %483 = vmatprep.subr.bf16.mxu1 %v569_v1 }
  0x21   :  { %468 = vmatmul.mubr.bf16.vlgmr.msra.gmra.mrb[0].mxu0 %v524_v15  ;;  %p553_p4 = pnand %p552_p3, %p546_p0 }
  0x22   :  { %507 = vmatprep.mubr.msk.bf16.mxu0 %vm570_vm0, %v569_v1  ;;  %492 = vmatpush3.bf16.msra.mxu0 %v533_v18 }
  0x23   :  { %484 = vmatpush3.bf16.msra.mxu1 %v531_v16  ;;  %493 = vmatprep.subr.bf16.mxu0 %v569_v1 }
  0x24   :  { %485 = vmatprep.subr.bf16.mxu1 %v569_v1 }
  0x26   :  { %494 = vmatpush3.bf16.msra.mxu0 %v534_v19 }
  0x27   :  { %486 = vmatpush3.bf16.msra.mxu1 %v532_v17  ;;  %495 = vmatprep.subr.bf16.mxu0 %v569_v1 }
  0x2a   :  { %496 = vmatpush3.bf16.msra.mxu0 %v535_v20 }
  0x2b   :  { %497 = vmatprep.subr.bf16.mxu0 %v569_v1 }
  0x2e   :  { %498 = vmatpush3.bf16.msra.mxu0 %v536_v21 }
  0x2f   :  { %499 = vmatprep.subr.bf16.mxu0 %v569_v1 }
  0x32   :  { %500 = vmatpush3.bf16.msra.mxu0 %v537_v32 }
  0x33   :  { %501 = vmatprep.subr.bf16.mxu0 %v569_v1 }
  0x36   :  { %502 = vmatpush3.bf16.msra.mxu0 %v538_v33 }
  0x37   :  { %503 = vmatprep.subr.bf16.mxu0 %v569_v1 }
  0x3a   :  { %504 = vmatpush3.bf16.msra.mxu0 %v539_v34 }
  0x3b   :  { %505 = vmatprep.subr.bf16.mxu0 %v569_v1 }
  0x3e   :  { %506 = vmatpush3.bf16.msra.mxu0 %v540_v35 }
  0xf4   :  { %v141_v23 = vpop.f32.mrb[0].mxu0 }
  0xf5   :  { %v142_v24 = vadd.f32 %v396_v22, %v141_v23  ;;  %v469_v25 = vpop.f32.mrb[1].mxu0 }
  0xf6   :  { %v144_v26 = vpop.f32.mrb[2].mxu0 }
  0xf7   :  { %v145_v27 = vadd.f32 %v396_v22, %v144_v26  ;;  %v470_v28 = vpop.f32.mrb[3].mxu0  ;;  %v148_v29 = vmax.f32 %v142_v24, 0.0 }
  0xf9   :  { %v149_v30 = vmax.f32 %v145_v27, 0.0 }
  0xfb   :  { %v150_v31 = vpack.c.bf16 %v149_v30, %v148_v29 }
  0xfd   :  { %488 = vmatmul.mubr.bf16.vlgmr.msra.gmra.mrb[0].mxu1 %v150_v31 }
 0x1d0   :  { %v256_v37 = vpop.f32.mrb[0].mxu1 }
 0x1d1   :  { %v257_v38 = vadd.f32 %v406_v36, %v256_v37  ;;  %v489_v39 = vpop.f32.mrb[1].mxu1 }
 0x1d2   :  { %v259_v40 = vpop.f32.mrb[2].mxu1 }
 0x1d3   :  { %v260_v41 = vadd.f32 %v406_v36, %v259_v40  ;;  %v490_v42 = vpop.f32.mrb[3].mxu1  ;;  %541 = vtanh.f32 %v257_v38 }
 0x1d5   :  { %543 = vtanh.f32 %v260_v41 }
 0x1dd   :  { %v542_v43 = vpop.eup %541 }
 0x1df   :  { %v544_v44 = vpop.eup %543 }
 0x1e0   :  { %v265_v45 = vpack.c.bf16 %v544_v44, %v542_v43 }
 0x1e2   :  { %508 = vmatmul.mubr.bf16.vlgmr.msra.gmra.mrb[4].mxu0 %v265_v45 }
 0x2b5   :  { %v371_v47 = vpop.f32.mrb[4].mxu0 }
 0x2b6   :  { %v372_v48 = vadd.f32 %v415_v46, %v371_v47  ;;  %v509_v49 = vpop.f32.mrb[5].mxu0 }
 0x2b7   :  { %v374_v50 = vpop.f32.mrb[6].mxu0 }
 0x2b8   :  { %378 = vst [vmem:[#allocation2] sm:$0xff] %v372_v48  ;;  %v375_v51 = vadd.f32 %v415_v46, %v374_v50  ;;  %v510_v52 = vpop.f32.mrb[7].mxu0 }
 0x2ba   :  { %379 = vst [vmem:[#allocation2 + $0x8] sm:$0xff] %v375_v51 }
 0x2bb   :  { %556 = shalt.err (!%p553_p4)
}
 0x2bc   :  { %s557_s8 = scalar_lea.hbm %s747_s7, 256 }
 0x2bd   :  { %p558_p5 = scmp.ne.s32.totalorder %s747_s7, %s557_s8  ;;  %p561_p6 = scmp.lt.u32.totalorder %s557_s8, %s747_s7 }
 0x2bf   :  { %p563_p7 = pnand %p561_p6, %p558_p5 }
 0x2c1   :  { %566 = shalt.err (!%p563_p7)
}
 0x2c2   :  { %s572_s12 = smov 128   ;;  %s573_s13 = smov 8  }
 0x2c3   :  { %391 = dma.vmem_to_hbm [thread:$0]  %s386_s30, 256, %s747_s7, [#allocation3], %s572_s12, %s572_s12, %s573_s13  }
 0x2c4   :  { %567 = dma.done.wait [#allocation3], 256  }
 0x2c5   :  { %568 = vsyncadd [#allocation3], 4294967040 }
 0x2c6   :  { %395 = vsyncpa [#allocation3], 1 }

</bundles_post_ra>
